<compile_context>
chip_gen: v7x
topology: tpu7x:2x2x1
jax: 0.10.0
libtpu: 0.0.40
codegen_flags: <defaults>
</compile_context>

<pallas_src>
from typing import Dict, List, Optional, Tuple

import jax
import jax.numpy as jnp
from jax.experimental import pallas as pl
from jax.experimental.pallas import tpu as pltpu


def build_dims(predictions: List[str]) -> Tuple[Dict[str, Optional[Tuple[int, int]]], int]:
    """Replicates ToDict.__init__ bookkeeping. Returns (dims, pred_dim)."""
    dims: Dict[str, Optional[Tuple[int, int]]] = {
        "pred_pos": None,
        "pred_spd": None,
        "pred_vel": None,
        "pred_yaw_bbox": None,
        "pred_cov": None,
    }
    pred_dim = 0
    if "pos" in predictions:
        dims["pred_pos"] = (pred_dim, pred_dim + 2)
        pred_dim += 2
    if "spd" in predictions:
        dims["pred_spd"] = (pred_dim, pred_dim + 1)
        pred_dim += 1
    if "vel" in predictions:
        dims["pred_vel"] = (pred_dim, pred_dim + 2)
        pred_dim += 2
    if "yaw_bbox" in predictions:
        dims["pred_yaw_bbox"] = (pred_dim, pred_dim + 1)
        pred_dim += 1
    if "cov1" in predictions:
        dims["pred_cov"] = (pred_dim, pred_dim + 1)
        pred_dim += 1
    elif "cov2" in predictions:
        dims["pred_cov"] = (pred_dim, pred_dim + 2)
        pred_dim += 2
    elif "cov3" in predictions:
        dims["pred_cov"] = (pred_dim, pred_dim + 3)
        pred_dim += 3
    return dims, pred_dim


def _make_split_kernel(slices: List[Tuple[int, int]]):
    """Kernel: read one row-tile of pred and write each static last-dim slice."""

    def kernel(x_ref, *out_refs):
        x = x_ref[...]  # [tile_rows, pred_dim]
        for (lo, hi), o_ref in zip(slices, out_refs):
            o_ref[...] = x[:, lo:hi]  # static slice along the lane axis

    return kernel


def _pick_tile_rows(rows: int, n_out: int, itemsize: int) -> int:
    """Row tile sized against real (lane-padded) VMEM cost, grid kept >= 2."""
    # Every VMEM buffer pads its last dim to 128 lanes; input + n_out outputs,
    # each double-buffered by the Pallas pipeline.
    bytes_per_row = (1 + n_out) * 128 * itemsize * 2
    vmem_budget = 24 * 1024 * 1024  # leave headroom under the 32 MiB scoped limit
    cap = max(8, min(8192, (vmem_budget // bytes_per_row) // 8 * 8))
    if rows < 16:
        # Single block equal to the full array dims (no (8,128) constraint then).
        return rows
    # Keep at least 2 grid steps so v7x megacore can split the row axis.
    half = ((pl.cdiv(rows, 2) + 7) // 8) * 8  # multiple of 8 (sublane)
    return min(cap, half)


def to_dict_pallas(pred_dict: Dict[str, jax.Array],
                   predictions: List[str]) -> Dict[str, Optional[jax.Array]]:
    dims, pred_dim = build_dims(predictions)
    pred = pred_dict["pred"]
    assert pred.shape[-1] == pred_dim, (pred.shape, pred_dim)

    result = dict(pred_dict)  # passthrough: valid, conf, pred stay untouched
    for k in dims:
        result[k] = None

    active = [(k, v) for k, v in dims.items() if v is not None]
    if not active:  # no heads enabled -> all None, nothing to launch
        return result

    lead_shape = pred.shape[:-1]
    rows = 1
    for s in lead_shape:
        rows *= s
    x = pred.reshape(rows, pred_dim)  # layout: [R, pred_dim]

    itemsize = jnp.dtype(pred.dtype).itemsize
    tile_rows = _pick_tile_rows(rows, len(active), itemsize)
    grid = (pl.cdiv(rows, tile_rows),)

    kernel = _make_split_kernel([v for _, v in active])

    out_shapes = tuple(
        jax.ShapeDtypeStruct((rows, hi - lo), pred.dtype) for _, (lo, hi) in active
    )
    out_specs = tuple(
        pl.BlockSpec((tile_rows, hi - lo), lambda i: (i, 0)) for _, (lo, hi) in active
    )

    write_bytes = rows * sum(hi - lo for _, (lo, hi) in active) * itemsize
    cost = pl.CostEstimate(
        flops=0,
        transcendentals=0,
        bytes_accessed=rows * pred_dim * itemsize + write_bytes,
    )

    outs = pl.pallas_call(
        kernel,
        out_shape=out_shapes,
        grid_spec=pltpu.PrefetchScalarGridSpec(
            num_scalar_prefetch=0,
            grid=grid,
            in_specs=[pl.BlockSpec((tile_rows, pred_dim), lambda i: (i, 0))],
            out_specs=out_specs,
        ),
        compiler_params=pltpu.CompilerParams(
            dimension_semantics=("parallel",),
            vmem_limit_bytes=32 * 1024 * 1024,
        ),
        cost_estimate=cost,
    )(x)

    for (name, (lo, hi)), o in zip(active, outs):
        result[name] = o.reshape(*lead_shape, hi - lo)
    return result


if __name__ == "__main__":
    key = jax.random.PRNGKey(0)

    predictions = ["pos", "spd", "vel", "yaw_bbox", "cov3"]  # pred_dim = 9
    # Small shapes; rows = 1*2*4*5*7 = 280 exercises the masked remainder block.
    n_decoders, n_scene, n_target, n_pred, n_step_future = 1, 2, 4, 5, 7
    _, pred_dim = build_dims(predictions)

    k1, k2, k3 = jax.random.split(key, 3)
    valid = jax.random.bernoulli(k1, 0.8, (n_scene, n_target))
    conf = jax.random.normal(k2, (n_decoders, n_scene, n_target, n_pred),
                             dtype=jnp.float32)
    pred = jax.random.normal(
        k3,
        (n_decoders, n_scene, n_target, n_pred, n_step_future, pred_dim),
        dtype=jnp.float32,
    )

    pred_dict = {"valid": valid, "conf": conf, "pred": pred}
    out = to_dict_pallas(pred_dict, predictions)
    jax.block_until_ready([v for v in out.values() if v is not None])

    # Correctness check against the reference slicing semantics.
    dims, _ = build_dims(predictions)
    ok = True
    for k, v in dims.items():
        if v is None:
            ok &= out[k] is None
        else:
            ref = pred[..., v[0]:v[1]]
            ok &= bool(jnp.array_equal(out[k], ref))
    assert ok, "mismatch vs reference slicing"
    print("KERNEL_OK")
</pallas_src>

<mosaic_0001>
module attributes {stable_mosaic.version = 11 : i64} {
  func.func @kernel(%arg0: i32, %arg1: memref<144x9xf32, #tpu.memory_space<vmem>>, %arg2: memref<144x2xf32, #tpu.memory_space<vmem>>, %arg3: memref<144x1xf32, #tpu.memory_space<vmem>>, %arg4: memref<144x2xf32, #tpu.memory_space<vmem>>, %arg5: memref<144x1xf32, #tpu.memory_space<vmem>>, %arg6: memref<144x3xf32, #tpu.memory_space<vmem>>) attributes {dimension_semantics = [#tpu.dimension_semantics<parallel>], iteration_bounds = array<i64: 2>, scalar_prefetch = 0 : i64, scratch_operands = 0 : i64, tpu.core_type = #tpu.core_type<tc>, window_params = [{transform_indices = @transform_0, window_bounds = array<i64: 144, 9>}, {transform_indices = @transform_1, window_bounds = array<i64: 144, 2>}, {transform_indices = @transform_2, window_bounds = array<i64: 144, 1>}, {transform_indices = @transform_3, window_bounds = array<i64: 144, 2>}, {transform_indices = @transform_4, window_bounds = array<i64: 144, 1>}, {transform_indices = @transform_5, window_bounds = array<i64: 144, 3>}]} {
    %c0 = arith.constant 0 : index
    %c0_0 = arith.constant 0 : index
    %0 = vector.load %arg1[%c0, %c0_0] : memref<144x9xf32, #tpu.memory_space<vmem>>, vector<144x9xf32>
    %1 = vector.extract_strided_slice %0 {offsets = [0, 0], sizes = [144, 2], strides = [1, 1]} : vector<144x9xf32> to vector<144x2xf32>
    %c0_1 = arith.constant 0 : index
    %c0_2 = arith.constant 0 : index
    %2 = vector.load %arg2[%c0_1, %c0_2] : memref<144x2xf32, #tpu.memory_space<vmem>>, vector<144x2xf32>
    tpu.vector_store %arg2[%c0_1, %c0_2], %1 {strides = array<i32>} : memref<144x2xf32, #tpu.memory_space<vmem>>, vector<144x2xf32>,
    %3 = vector.extract_strided_slice %0 {offsets = [0, 2], sizes = [144, 1], strides = [1, 1]} : vector<144x9xf32> to vector<144x1xf32>
    %c0_3 = arith.constant 0 : index
    %c0_4 = arith.constant 0 : index
    %4 = vector.load %arg3[%c0_3, %c0_4] : memref<144x1xf32, #tpu.memory_space<vmem>>, vector<144x1xf32>
    tpu.vector_store %arg3[%c0_3, %c0_4], %3 {strides = array<i32>} : memref<144x1xf32, #tpu.memory_space<vmem>>, vector<144x1xf32>,
    %5 = vector.extract_strided_slice %0 {offsets = [0, 3], sizes = [144, 2], strides = [1, 1]} : vector<144x9xf32> to vector<144x2xf32>
    %c0_5 = arith.constant 0 : index
    %c0_6 = arith.constant 0 : index
    %6 = vector.load %arg4[%c0_5, %c0_6] : memref<144x2xf32, #tpu.memory_space<vmem>>, vector<144x2xf32>
    tpu.vector_store %arg4[%c0_5, %c0_6], %5 {strides = array<i32>} : memref<144x2xf32, #tpu.memory_space<vmem>>, vector<144x2xf32>,
    %7 = vector.extract_strided_slice %0 {offsets = [0, 5], sizes = [144, 1], strides = [1, 1]} : vector<144x9xf32> to vector<144x1xf32>
    %c0_7 = arith.constant 0 : index
    %c0_8 = arith.constant 0 : index
    %8 = vector.load %arg5[%c0_7, %c0_8] : memref<144x1xf32, #tpu.memory_space<vmem>>, vector<144x1xf32>
    tpu.vector_store %arg5[%c0_7, %c0_8], %7 {strides = array<i32>} : memref<144x1xf32, #tpu.memory_space<vmem>>, vector<144x1xf32>,
    %9 = vector.extract_strided_slice %0 {offsets = [0, 6], sizes = [144, 3], strides = [1, 1]} : vector<144x9xf32> to vector<144x3xf32>
    %c0_9 = arith.constant 0 : index
    %c0_10 = arith.constant 0 : index
    %10 = vector.load %arg6[%c0_9, %c0_10] : memref<144x3xf32, #tpu.memory_space<vmem>>, vector<144x3xf32>
    tpu.vector_store %arg6[%c0_9, %c0_10], %9 {strides = array<i32>} : memref<144x3xf32, #tpu.memory_space<vmem>>, vector<144x3xf32>,
    return
  }
  func.func @transform_0(%arg0: i32) -> (i32, i32) {
    %c0_i32 = arith.constant 0 : i32
    %c0_i32_0 = arith.constant 0 : i32
    return %arg0, %c0_i32 : i32, i32
  }
  func.func @transform_1(%arg0: i32) -> (i32, i32) {
    %c0_i32 = arith.constant 0 : i32
    %c0_i32_0 = arith.constant 0 : i32
    return %arg0, %c0_i32 : i32, i32
  }
  func.func @transform_2(%arg0: i32) -> (i32, i32) {
    %c0_i32 = arith.constant 0 : i32
    %c0_i32_0 = arith.constant 0 : i32
    return %arg0, %c0_i32 : i32, i32
  }
  func.func @transform_3(%arg0: i32) -> (i32, i32) {
    %c0_i32 = arith.constant 0 : i32
    %c0_i32_0 = arith.constant 0 : i32
    return %arg0, %c0_i32 : i32, i32
  }
  func.func @transform_4(%arg0: i32) -> (i32, i32) {
    %c0_i32 = arith.constant 0 : i32
    %c0_i32_0 = arith.constant 0 : i32
    return %arg0, %c0_i32 : i32, i32
  }
  func.func @transform_5(%arg0: i32) -> (i32, i32) {
    %c0_i32 = arith.constant 0 : i32
    %c0_i32_0 = arith.constant 0 : i32
    return %arg0, %c0_i32 : i32, i32
  }
}

</mosaic_0001>

<bundles_post_ra>
// kernel: tpu_custom_call.1
= control target key start
LH: loop header
LB: loop body
LE: loop exit
PB: predicated region body
PF: predicated region fallthrough
CT: control target
= control target key end

     0   :  { %s3651_s0 = inlined_call_operand.vmem [shape: f32[280,9], index: 0, kind: input, shape index: {}]   ;;  %s3652_s1 = inlined_call_operand.vmem [shape: f32[280,2], index: 1, kind: output, shape index: {0}]   ;;  %s3653_s2 = inlined_call_operand.vmem [shape: f32[280,1], index: 2, kind: output, shape index: {1}]   ;;  %s3654_s3 = inlined_call_operand.vmem [shape: f32[280,2], index: 3, kind: output, shape index: {2}]   ;;  %s3655_s4 = inlined_call_operand.vmem [shape: f32[280,1], index: 4, kind: output, shape index: {3}]   ;;  %s3656_s5 = inlined_call_operand.vmem [shape: f32[280,3], index: 5, kind: output, shape index: {4}]  }
   0x1   :  { %3657 = sst [smem:[#allocation7_spill]] %s3651_s0 }
   0x2   :  { %3658 = sst [smem:[#allocation8_spill]] %s3652_s1 }
   0x3   :  { %s2783_s18 = smov 0   ;;  %s2785_s19 = smov 0  }
   0x4   :  { %s2787_s20 = smov 0  }
   0x5 LB: > { %s2794_s21 = sadd.s32 4294967295, %s2587_s20   ;;  %s2796_s22 = sadd.s32 1, %s2587_s20   ;;  %s2587_s20 = sphi %s2787_s20, %s3679_s20   ;;  %s2583_s19 = sphi %s2785_s19, %s3678_s19   ;;  %s2579_s18 = sphi %s2783_s18, %s3677_s18  }
   0x6   : > { %s46_s23 = ssub.s32 %s2587_s20, %s2796_s22  ;;  %s49_s24 = sadd.s32 1, %s2583_s19 }
   0x7   : > { %p47_p0 = scmp.eq.s32.totalorder %s46_s23, 0  ;;  %p59_p1 = scmp.ne.s32.totalorder %s2583_s19, %s2579_s18 }
   0x8   : > { %p60_p2 = scmp.eq.s32.totalorder %s2794_s21, 1  ;;  %p1972_p3 = scmp.ge.s32.totalorder %s2587_s20, 1 }
   0x9   : > { %s2803_s25 = scalar_select %p47_p0, %s2583_s19, %s49_s24  }
   0xa   : > { %p2805_p4 = por %p60_p2, %p59_p1  ;;  %p205_p5 = scmp.lt.s32.totalorder %s2587_s20, 3 }
   0xc   : > { %p206_p6 = pnand %p1972_p3, %p205_p5 }
   0xd   : > { %s2810_s27 = smul.u32 (!%p206_p6), 18, %s2794_s21  ;;  %s225_s28 = sand.u32 (!%p206_p6), 1, %s2579_s18   ;;  %vm309_vm0 = vcmask (!%p206_p6), 15360   ;;  %vm400_vm1 = vcmask (!%p206_p6), 7168   ;;  %vm617_vm2 = vcmask (!%p206_p6), 23552  }
   0xe   : > { %209 = sbr.rel (%p206_p6) target bundleno = 617 (0x269), region = 24  ;;  %s3660_s0 = sld [smem:[#allocation7_spill]] (!%p206_p6) }
   0xf   : > { %p257_p7 = scmp.lt.s32.totalorder (!%p206_p6), %s2810_s27, 34  ;;  %s2813_s29 = smul.u32 (!%p206_p6), 144, %s225_s28 }
  0x10   : > { %s2749_s10 = smov (!%p206_p6), 126   ;;  %s2750_s12 = smov (!%p206_p6), 125  }
  0x11   : > { %s2833_s11 = scalar_lea.vmem (!%p206_p6), [#allocation2], %s2813_s29   ;;  %s2751_s13 = smov (!%p206_p6), 123  }
  0x12   : > { %s2752_s14 = smov (!%p206_p6), 122   ;;  %s3013_s15 = scalar_lea.vmem (!%p206_p6), [#allocation3], %s2813_s29  }
  0x13   : > { %s3080_s16 = scalar_lea.vmem (!%p206_p6), [#allocation4], %s2813_s29   ;;  %s3119_s17 = scalar_lea.vmem (!%p206_p6), [#allocation5], %s2813_s29  }
  0x14   : > { %s3158_s18 = scalar_lea.vmem (!%p206_p6), [#allocation6], %s2813_s29  }
  0x15   : > { %s258_s30 = scalar_select %p257_p7, %s2810_s27, 34 }
  0x16   : > { %s660_s20 = ssub.s32 (%p2805_p4), 35, %s2810_s27  ;;  %s2026_s23 = smul.u32 (%p2805_p4), 144, %s2794_s21 }
  0x17   : > { %s1973_s6 = sshll.u32 %s258_s30, 3  ;;  %p661_p8 = scmp.lt.s32.totalorder (%p2805_p4), %s660_s20, 18 }
  0x18   : > { %s2819_s9 = scalar_lea.vmem %s3660_s0, %s1973_s6  ;;  %s3661_s1 = sld [smem:[#allocation8_spill]] (%p2805_p4) }
  0x19   : > { %v2822_v0 = vld [vmem:[%s2819_s9 + $0x10] sm:$0xff]  ;;  %v2825_v1 = vld [vmem:[%s2819_s9] sm:$0xff]  ;;  %v2828_v2 = vld [vmem:[%s2819_s9 + $0x18] sm:$0xff] }
  0x1a   : > { %350 = vrot.lane.b32.xlu1 %v2822_v0, %s2749_s10  ;;  %312 = vst.msk [vmem:[%s2833_s11 + $0x10] sm:$0xff] %vm309_vm0, %v2822_v0  ;;  %346 = vrot.lane.b32.xlu0 %v2825_v1, %s2749_s10  ;;  %310 = vst.msk [vmem:[%s2833_s11] sm:$0xff] %vm309_vm0, %v2825_v1 }
  0x1b   : > { %313 = vst.msk [vmem:[%s2833_s11 + $0x18] sm:$0xff] %vm309_vm0, %v2828_v2  ;;  %v2847_v3 = vld [vmem:[%s2819_s9 + $0x8] sm:$0xff]  ;;  %v2859_v5 = vld [vmem:[%s2819_s9 + $0x20] sm:$0xff]  ;;  %v2862_v6 = vld [vmem:[%s2819_s9 + $0x38] sm:$0xff] }
  0x1c   : > { %v2850_v4 = vld [vmem:[%s2819_s9 + $0x28] sm:$0xff]  ;;  %311 = vst.msk [vmem:[%s2833_s11 + $0x8] sm:$0xff] %vm309_vm0, %v2847_v3  ;;  %v2865_v7 = vld [vmem:[%s2819_s9 + $0x30] sm:$0xff]  ;;  %314 = vst.msk [vmem:[%s2833_s11 + $0x20] sm:$0xff] %vm309_vm0, %v2859_v5 }
  0x1d   : > { %315 = vst.msk [vmem:[%s2833_s11 + $0x28] sm:$0xff] %vm309_vm0, %v2850_v4  ;;  %317 = vst.msk [vmem:[%s2833_s11 + $0x38] sm:$0xff] %vm309_vm0, %v2862_v6  ;;  %v2877_v8 = vld [vmem:[%s2819_s9 + $0x48] sm:$0xff]  ;;  %v2880_v9 = vld [vmem:[%s2819_s9 + $0x40] sm:$0xff] }
  0x1e   : > { %316 = vst.msk [vmem:[%s2833_s11 + $0x30] sm:$0xff] %vm309_vm0, %v2865_v7  ;;  %v2883_v10 = vld [vmem:[%s2819_s9 + $0x58] sm:$0xff]  ;;  %319 = vst.msk [vmem:[%s2833_s11 + $0x48] sm:$0xff] %vm309_vm0, %v2877_v8  ;;  %v2895_v11 = vld [vmem:[%s2819_s9 + $0x50] sm:$0xff]  ;;  %s3203_s29 = scalar_lea.vmem (%p2805_p4), %s3661_s1, %s2026_s23  }
  0x1f   : > { %318 = vst.msk [vmem:[%s2833_s11 + $0x40] sm:$0xff] %vm309_vm0, %v2880_v9  ;;  %321 = vst.msk [vmem:[%s2833_s11 + $0x58] sm:$0xff] %vm309_vm0, %v2883_v10  ;;  %v2898_v12 = vld [vmem:[%s2819_s9 + $0x68] sm:$0xff]  ;;  %v2901_v13 = vld [vmem:[%s2819_s9 + $0x60] sm:$0xff] }
  0x20   : > { %352 = vrot.lane.b32.xlu1 %v2828_v2, %s2749_s10  ;;  %348 = vrot.lane.b32.xlu0 %v2847_v3, %s2749_s10  ;;  %320 = vst.msk [vmem:[%s2833_s11 + $0x50] sm:$0xff] %vm309_vm0, %v2895_v11  ;;  %323 = vst.msk [vmem:[%s2833_s11 + $0x68] sm:$0xff] %vm309_vm0, %v2898_v12 }
  0x21   : > { %322 = vst.msk [vmem:[%s2833_s11 + $0x60] sm:$0xff] %vm309_vm0, %v2901_v13  ;;  %v2917_v14 = vld [vmem:[%s2819_s9 + $0x78] sm:$0xff]  ;;  %v2920_v15 = vld [vmem:[%s2819_s9 + $0x70] sm:$0xff]  ;;  %v2929_v16 = vld [vmem:[%s2819_s9 + $0x88] sm:$0xff] }
  0x22   : > { %325 = vst.msk [vmem:[%s2833_s11 + $0x78] sm:$0xff] %vm309_vm0, %v2917_v14  ;;  %324 = vst.msk [vmem:[%s2833_s11 + $0x70] sm:$0xff] %vm309_vm0, %v2920_v15  ;;  %v2932_v17 = vld [vmem:[%s2819_s9 + $0x80] sm:$0xff] }
  0x23   : > { %327 = vst.msk [vmem:[%s2833_s11 + $0x88] sm:$0xff] %vm309_vm0, %v2929_v16  ;;  %326 = vst.msk [vmem:[%s2833_s11 + $0x80] sm:$0xff] %vm309_vm0, %v2932_v17 }
  0x24   : > { %356 = vrot.lane.b32.xlu1 %v2850_v4, %s2749_s10  ;;  %354 = vrot.lane.b32.xlu0 %v2859_v5, %s2749_s10 }
  0x28   : > { %360 = vrot.lane.b32.xlu1 %v2862_v6, %s2749_s10  ;;  %358 = vrot.lane.b32.xlu0 %v2865_v7, %s2749_s10 }
  0x2c   : > { %364 = vrot.lane.b32.xlu1 %v2877_v8, %s2749_s10  ;;  %362 = vrot.lane.b32.xlu0 %v2880_v9, %s2749_s10 }
  0x30   : > { %368 = vrot.lane.b32.xlu1 %v2883_v10, %s2749_s10  ;;  %366 = vrot.lane.b32.xlu0 %v2895_v11, %s2749_s10 }
  0x34   : > { %372 = vrot.lane.b32.xlu1 %v2898_v12, %s2749_s10  ;;  %370 = vrot.lane.b32.xlu0 %v2901_v13, %s2749_s10 }
  0x38   : > { %376 = vrot.lane.b32.xlu1 %v2917_v14, %s2749_s10  ;;  %374 = vrot.lane.b32.xlu0 %v2920_v15, %s2749_s10 }
  0x3c   : > { %380 = vrot.lane.b32.xlu1 %v2929_v16, %s2749_s10  ;;  %378 = vrot.lane.b32.xlu0 %v2932_v17, %s2749_s10 }
  0x40   : > { %421 = vrot.lane.b32.xlu1 %v2847_v3, %s2750_s12  ;;  %419 = vrot.lane.b32.xlu0 %v2825_v1, %s2750_s12 }
  0x44   : > { %425 = vrot.lane.b32.xlu1 %v2828_v2, %s2750_s12  ;;  %423 = vrot.lane.b32.xlu0 %v2822_v0, %s2750_s12 }
  0x48   : > { %429 = vrot.lane.b32.xlu1 %v2850_v4, %s2750_s12  ;;  %427 = vrot.lane.b32.xlu0 %v2859_v5, %s2750_s12 }
  0x4c   : > { %433 = vrot.lane.b32.xlu1 %v2862_v6, %s2750_s12  ;;  %431 = vrot.lane.b32.xlu0 %v2865_v7, %s2750_s12 }
  0x50   : > { %437 = vrot.lane.b32.xlu1 %v2877_v8, %s2750_s12  ;;  %435 = vrot.lane.b32.xlu0 %v2880_v9, %s2750_s12 }
  0x54   : > { %441 = vrot.lane.b32.xlu1 %v2883_v10, %s2750_s12  ;;  %439 = vrot.lane.b32.xlu0 %v2895_v11, %s2750_s12 }
  0x58   : > { %445 = vrot.lane.b32.xlu1 %v2898_v12, %s2750_s12  ;;  %443 = vrot.lane.b32.xlu0 %v2901_v13, %s2750_s12 }
  0x5c   : > { %449 = vrot.lane.b32.xlu1 %v2917_v14, %s2750_s12  ;;  %447 = vrot.lane.b32.xlu0 %v2920_v15, %s2750_s12 }
  0x60   : > { %453 = vrot.lane.b32.xlu1 %v2929_v16, %s2750_s12  ;;  %451 = vrot.lane.b32.xlu0 %v2932_v17, %s2750_s12 }
  0x64   : > { %493 = vrot.lane.b32.xlu1 %v2847_v3, %s2751_s13  ;;  %491 = vrot.lane.b32.xlu0 %v2825_v1, %s2751_s13 }
  0x68   : > { %497 = vrot.lane.b32.xlu1 %v2828_v2, %s2751_s13  ;;  %495 = vrot.lane.b32.xlu0 %v2822_v0, %s2751_s13 }
  0x6c   : > { %501 = vrot.lane.b32.xlu1 %v2850_v4, %s2751_s13  ;;  %499 = vrot.lane.b32.xlu0 %v2859_v5, %s2751_s13 }
  0x70   : > { %505 = vrot.lane.b32.xlu1 %v2862_v6, %s2751_s13  ;;  %503 = vrot.lane.b32.xlu0 %v2865_v7, %s2751_s13 }
  0x74   : > { %509 = vrot.lane.b32.xlu1 %v2877_v8, %s2751_s13  ;;  %507 = vrot.lane.b32.xlu0 %v2880_v9, %s2751_s13 }
  0x78   : > { %513 = vrot.lane.b32.xlu1 %v2883_v10, %s2751_s13  ;;  %511 = vrot.lane.b32.xlu0 %v2895_v11, %s2751_s13 }
  0x7c   : > { %517 = vrot.lane.b32.xlu1 %v2898_v12, %s2751_s13  ;;  %515 = vrot.lane.b32.xlu0 %v2901_v13, %s2751_s13 }
  0x80   : > { %521 = vrot.lane.b32.xlu1 %v2917_v14, %s2751_s13  ;;  %519 = vrot.lane.b32.xlu0 %v2920_v15, %s2751_s13 }
  0x84   : > { %525 = vrot.lane.b32.xlu1 %v2929_v16, %s2751_s13  ;;  %523 = vrot.lane.b32.xlu0 %v2932_v17, %s2751_s13 }
  0x88   : > { %565 = vrot.lane.b32.xlu1 %v2847_v3, %s2752_s14  ;;  %563 = vrot.lane.b32.xlu0 %v2825_v1, %s2752_s14 }
  0x8c   : > { %569 = vrot.lane.b32.xlu1 %v2828_v2, %s2752_s14  ;;  %567 = vrot.lane.b32.xlu0 %v2822_v0, %s2752_s14  ;;  %v351_v18 = vpop.permute.xlu1 %350  ;;  %v347_v19 = vpop.permute.xlu0 %346 }
  0x8d   : > { %403 = vst.msk [vmem:[%s3013_s15 + $0x10] sm:$0xff] %vm400_vm1, %v351_v18  ;;  %401 = vst.msk [vmem:[%s3013_s15] sm:$0xff] %vm400_vm1, %v347_v19 }
  0x90   : > { %573 = vrot.lane.b32.xlu1 %v2850_v4, %s2752_s14  ;;  %571 = vrot.lane.b32.xlu0 %v2859_v5, %s2752_s14 }
  0x92   : > { %v353_v20 = vpop.permute.xlu1 %352  ;;  %v349_v21 = vpop.permute.xlu0 %348 }
  0x93   : > { %404 = vst.msk [vmem:[%s3013_s15 + $0x18] sm:$0xff] %vm400_vm1, %v353_v20  ;;  %402 = vst.msk [vmem:[%s3013_s15 + $0x8] sm:$0xff] %vm400_vm1, %v349_v21 }
  0x94   : > { %577 = vrot.lane.b32.xlu1 %v2862_v6, %s2752_s14  ;;  %575 = vrot.lane.b32.xlu0 %v2865_v7, %s2752_s14 }
  0x96   : > { %v357_v22 = vpop.permute.xlu1 %356  ;;  %v355_v23 = vpop.permute.xlu0 %354 }
  0x97   : > { %406 = vst.msk [vmem:[%s3013_s15 + $0x28] sm:$0xff] %vm400_vm1, %v357_v22  ;;  %405 = vst.msk [vmem:[%s3013_s15 + $0x20] sm:$0xff] %vm400_vm1, %v355_v23 }
  0x98   : > { %581 = vrot.lane.b32.xlu1 %v2877_v8, %s2752_s14  ;;  %579 = vrot.lane.b32.xlu0 %v2880_v9, %s2752_s14 }
  0x9a   : > { %v361_v24 = vpop.permute.xlu1 %360  ;;  %v359_v25 = vpop.permute.xlu0 %358 }
  0x9b   : > { %408 = vst.msk [vmem:[%s3013_s15 + $0x38] sm:$0xff] %vm400_vm1, %v361_v24  ;;  %407 = vst.msk [vmem:[%s3013_s15 + $0x30] sm:$0xff] %vm400_vm1, %v359_v25 }
  0x9c   : > { %585 = vrot.lane.b32.xlu1 %v2883_v10, %s2752_s14  ;;  %583 = vrot.lane.b32.xlu0 %v2895_v11, %s2752_s14 }
  0x9e   : > { %v365_v26 = vpop.permute.xlu1 %364  ;;  %v363_v27 = vpop.permute.xlu0 %362 }
  0x9f   : > { %410 = vst.msk [vmem:[%s3013_s15 + $0x48] sm:$0xff] %vm400_vm1, %v365_v26  ;;  %409 = vst.msk [vmem:[%s3013_s15 + $0x40] sm:$0xff] %vm400_vm1, %v363_v27 }
  0xa0   : > { %589 = vrot.lane.b32.xlu1 %v2898_v12, %s2752_s14  ;;  %587 = vrot.lane.b32.xlu0 %v2901_v13, %s2752_s14 }
  0xa2   : > { %v369_v28 = vpop.permute.xlu1 %368  ;;  %v367_v29 = vpop.permute.xlu0 %366 }
  0xa3   : > { %412 = vst.msk [vmem:[%s3013_s15 + $0x58] sm:$0xff] %vm400_vm1, %v369_v28  ;;  %411 = vst.msk [vmem:[%s3013_s15 + $0x50] sm:$0xff] %vm400_vm1, %v367_v29 }
  0xa4   : > { %593 = vrot.lane.b32.xlu1 %v2917_v14, %s2752_s14  ;;  %591 = vrot.lane.b32.xlu0 %v2920_v15, %s2752_s14 }
  0xa6   : > { %v373_v30 = vpop.permute.xlu1 %372  ;;  %v371_v31 = vpop.permute.xlu0 %370 }
  0xa7   : > { %414 = vst.msk [vmem:[%s3013_s15 + $0x68] sm:$0xff] %vm400_vm1, %v373_v30  ;;  %413 = vst.msk [vmem:[%s3013_s15 + $0x60] sm:$0xff] %vm400_vm1, %v371_v31 }
  0xa8   : > { %597 = vrot.lane.b32.xlu1 %v2929_v16, %s2752_s14  ;;  %595 = vrot.lane.b32.xlu0 %v2932_v17, %s2752_s14 }
  0xaa   : > { %v377_v32 = vpop.permute.xlu1 %376  ;;  %v375_v33 = vpop.permute.xlu0 %374 }
  0xab   : > { %416 = vst.msk [vmem:[%s3013_s15 + $0x78] sm:$0xff] %vm400_vm1, %v377_v32  ;;  %415 = vst.msk [vmem:[%s3013_s15 + $0x70] sm:$0xff] %vm400_vm1, %v375_v33 }
  0xae   : > { %v381_v34 = vpop.permute.xlu1 %380  ;;  %v379_v35 = vpop.permute.xlu0 %378 }
  0xaf   : > { %418 = vst.msk [vmem:[%s3013_s15 + $0x88] sm:$0xff] %vm400_vm1, %v381_v34  ;;  %417 = vst.msk [vmem:[%s3013_s15 + $0x80] sm:$0xff] %vm400_vm1, %v379_v35 }
  0xb2   : > { %v422_v36 = vpop.permute.xlu1 %421  ;;  %v420_v37 = vpop.permute.xlu0 %419 }
  0xb3   : > { %474 = vst.msk [vmem:[%s3080_s16 + $0x8] sm:$0xff] %vm309_vm0, %v422_v36  ;;  %473 = vst.msk [vmem:[%s3080_s16] sm:$0xff] %vm309_vm0, %v420_v37 }
  0xb6   : > { %v426_v38 = vpop.permute.xlu1 %425  ;;  %v424_v39 = vpop.permute.xlu0 %423 }
  0xb7   : > { %476 = vst.msk [vmem:[%s3080_s16 + $0x18] sm:$0xff] %vm309_vm0, %v426_v38  ;;  %475 = vst.msk [vmem:[%s3080_s16 + $0x10] sm:$0xff] %vm309_vm0, %v424_v39 }
  0xba   : > { %v430_v40 = vpop.permute.xlu1 %429  ;;  %v428_v41 = vpop.permute.xlu0 %427 }
  0xbb   : > { %478 = vst.msk [vmem:[%s3080_s16 + $0x28] sm:$0xff] %vm309_vm0, %v430_v40  ;;  %477 = vst.msk [vmem:[%s3080_s16 + $0x20] sm:$0xff] %vm309_vm0, %v428_v41 }
  0xbe   : > { %v434_v42 = vpop.permute.xlu1 %433  ;;  %v432_v43 = vpop.permute.xlu0 %431 }
  0xbf   : > { %480 = vst.msk [vmem:[%s3080_s16 + $0x38] sm:$0xff] %vm309_vm0, %v434_v42  ;;  %479 = vst.msk [vmem:[%s3080_s16 + $0x30] sm:$0xff] %vm309_vm0, %v432_v43 }
  0xc2   : > { %v438_v44 = vpop.permute.xlu1 %437  ;;  %v436_v45 = vpop.permute.xlu0 %435 }
  0xc3   : > { %482 = vst.msk [vmem:[%s3080_s16 + $0x48] sm:$0xff] %vm309_vm0, %v438_v44  ;;  %481 = vst.msk [vmem:[%s3080_s16 + $0x40] sm:$0xff] %vm309_vm0, %v436_v45 }
  0xc6   : > { %v442_v46 = vpop.permute.xlu1 %441  ;;  %v440_v47 = vpop.permute.xlu0 %439 }
  0xc7   : > { %484 = vst.msk [vmem:[%s3080_s16 + $0x58] sm:$0xff] %vm309_vm0, %v442_v46  ;;  %483 = vst.msk [vmem:[%s3080_s16 + $0x50] sm:$0xff] %vm309_vm0, %v440_v47 }
  0xca   : > { %v446_v48 = vpop.permute.xlu1 %445  ;;  %v444_v49 = vpop.permute.xlu0 %443 }
  0xcb   : > { %486 = vst.msk [vmem:[%s3080_s16 + $0x68] sm:$0xff] %vm309_vm0, %v446_v48  ;;  %485 = vst.msk [vmem:[%s3080_s16 + $0x60] sm:$0xff] %vm309_vm0, %v444_v49 }
  0xce   : > { %v450_v50 = vpop.permute.xlu1 %449  ;;  %v448_v51 = vpop.permute.xlu0 %447 }
  0xcf   : > { %488 = vst.msk [vmem:[%s3080_s16 + $0x78] sm:$0xff] %vm309_vm0, %v450_v50  ;;  %487 = vst.msk [vmem:[%s3080_s16 + $0x70] sm:$0xff] %vm309_vm0, %v448_v51 }
  0xd2   : > { %v454_v52 = vpop.permute.xlu1 %453  ;;  %v452_v53 = vpop.permute.xlu0 %451 }
  0xd3   : > { %490 = vst.msk [vmem:[%s3080_s16 + $0x88] sm:$0xff] %vm309_vm0, %v454_v52  ;;  %489 = vst.msk [vmem:[%s3080_s16 + $0x80] sm:$0xff] %vm309_vm0, %v452_v53 }
  0xd6   : > { %v494_v54 = vpop.permute.xlu1 %493  ;;  %v492_v55 = vpop.permute.xlu0 %491 }
  0xd7   : > { %546 = vst.msk [vmem:[%s3119_s17 + $0x8] sm:$0xff] %vm400_vm1, %v494_v54  ;;  %545 = vst.msk [vmem:[%s3119_s17] sm:$0xff] %vm400_vm1, %v492_v55 }
  0xda   : > { %v498_v56 = vpop.permute.xlu1 %497  ;;  %v496_v57 = vpop.permute.xlu0 %495 }
  0xdb   : > { %548 = vst.msk [vmem:[%s3119_s17 + $0x18] sm:$0xff] %vm400_vm1, %v498_v56  ;;  %547 = vst.msk [vmem:[%s3119_s17 + $0x10] sm:$0xff] %vm400_vm1, %v496_v57 }
  0xde   : > { %v502_v58 = vpop.permute.xlu1 %501  ;;  %v500_v59 = vpop.permute.xlu0 %499 }
  0xdf   : > { %550 = vst.msk [vmem:[%s3119_s17 + $0x28] sm:$0xff] %vm400_vm1, %v502_v58  ;;  %549 = vst.msk [vmem:[%s3119_s17 + $0x20] sm:$0xff] %vm400_vm1, %v500_v59 }
  0xe2   : > { %v506_v60 = vpop.permute.xlu1 %505  ;;  %v504_v61 = vpop.permute.xlu0 %503 }
  0xe3   : > { %552 = vst.msk [vmem:[%s3119_s17 + $0x38] sm:$0xff] %vm400_vm1, %v506_v60  ;;  %551 = vst.msk [vmem:[%s3119_s17 + $0x30] sm:$0xff] %vm400_vm1, %v504_v61 }
  0xe6   : > { %v510_v62 = vpop.permute.xlu1 %509  ;;  %v508_v63 = vpop.permute.xlu0 %507 }
  0xe7   : > { %554 = vst.msk [vmem:[%s3119_s17 + $0x48] sm:$0xff] %vm400_vm1, %v510_v62  ;;  %553 = vst.msk [vmem:[%s3119_s17 + $0x40] sm:$0xff] %vm400_vm1, %v508_v63 }
  0xea   : > { %v514_v0 = vpop.permute.xlu1 %513  ;;  %v512_v1 = vpop.permute.xlu0 %511 }
  0xeb   : > { %556 = vst.msk [vmem:[%s3119_s17 + $0x58] sm:$0xff] %vm400_vm1, %v514_v0  ;;  %555 = vst.msk [vmem:[%s3119_s17 + $0x50] sm:$0xff] %vm400_vm1, %v512_v1 }
  0xee   : > { %v518_v2 = vpop.permute.xlu1 %517  ;;  %v516_v3 = vpop.permute.xlu0 %515 }
  0xef   : > { %558 = vst.msk [vmem:[%s3119_s17 + $0x68] sm:$0xff] %vm400_vm1, %v518_v2  ;;  %557 = vst.msk [vmem:[%s3119_s17 + $0x60] sm:$0xff] %vm400_vm1, %v516_v3 }
  0xf2   : > { %v522_v4 = vpop.permute.xlu1 %521  ;;  %v520_v5 = vpop.permute.xlu0 %519 }
  0xf3   : > { %560 = vst.msk [vmem:[%s3119_s17 + $0x78] sm:$0xff] %vm400_vm1, %v522_v4  ;;  %559 = vst.msk [vmem:[%s3119_s17 + $0x70] sm:$0xff] %vm400_vm1, %v520_v5 }
  0xf6   : > { %v526_v6 = vpop.permute.xlu1 %525  ;;  %v524_v7 = vpop.permute.xlu0 %523 }
  0xf7   : > { %562 = vst.msk [vmem:[%s3119_s17 + $0x88] sm:$0xff] %vm400_vm1, %v526_v6  ;;  %561 = vst.msk [vmem:[%s3119_s17 + $0x80] sm:$0xff] %vm400_vm1, %v524_v7 }
  0xfa   : > { %v566_v8 = vpop.permute.xlu1 %565  ;;  %v564_v9 = vpop.permute.xlu0 %563 }
  0xfb   : > { %619 = vst.msk [vmem:[%s3158_s18 + $0x8] sm:$0xff] %vm617_vm2, %v566_v8  ;;  %618 = vst.msk [vmem:[%s3158_s18] sm:$0xff] %vm617_vm2, %v564_v9 }
  0xfe   : > { %v570_v10 = vpop.permute.xlu1 %569  ;;  %v568_v11 = vpop.permute.xlu0 %567 }
  0xff   : > { %621 = vst.msk [vmem:[%s3158_s18 + $0x18] sm:$0xff] %vm617_vm2, %v570_v10  ;;  %620 = vst.msk [vmem:[%s3158_s18 + $0x10] sm:$0xff] %vm617_vm2, %v568_v11 }
 0x102   : > { %v574_v12 = vpop.permute.xlu1 %573  ;;  %v572_v13 = vpop.permute.xlu0 %571 }
 0x103   : > { %623 = vst.msk [vmem:[%s3158_s18 + $0x28] sm:$0xff] %vm617_vm2, %v574_v12  ;;  %622 = vst.msk [vmem:[%s3158_s18 + $0x20] sm:$0xff] %vm617_vm2, %v572_v13 }
 0x106   : > { %v578_v14 = vpop.permute.xlu1 %577  ;;  %v576_v15 = vpop.permute.xlu0 %575 }
 0x107   : > { %625 = vst.msk [vmem:[%s3158_s18 + $0x38] sm:$0xff] %vm617_vm2, %v578_v14  ;;  %624 = vst.msk [vmem:[%s3158_s18 + $0x30] sm:$0xff] %vm617_vm2, %v576_v15 }
 0x10a   : > { %v582_v16 = vpop.permute.xlu1 %581  ;;  %v580_v17 = vpop.permute.xlu0 %579 }
 0x10b   : > { %627 = vst.msk [vmem:[%s3158_s18 + $0x48] sm:$0xff] %vm617_vm2, %v582_v16  ;;  %626 = vst.msk [vmem:[%s3158_s18 + $0x40] sm:$0xff] %vm617_vm2, %v580_v17 }
 0x10e   : > { %v586_v18 = vpop.permute.xlu1 %585  ;;  %v584_v19 = vpop.permute.xlu0 %583 }
 0x10f   : > { %629 = vst.msk [vmem:[%s3158_s18 + $0x58] sm:$0xff] %vm617_vm2, %v586_v18  ;;  %628 = vst.msk [vmem:[%s3158_s18 + $0x50] sm:$0xff] %vm617_vm2, %v584_v19 }
 0x112   : > { %v590_v20 = vpop.permute.xlu1 %589  ;;  %v588_v21 = vpop.permute.xlu0 %587 }
 0x113   : > { %631 = vst.msk [vmem:[%s3158_s18 + $0x68] sm:$0xff] %vm617_vm2, %v590_v20  ;;  %630 = vst.msk [vmem:[%s3158_s18 + $0x60] sm:$0xff] %vm617_vm2, %v588_v21 }
 0x115   : > { %658 = sbr.rel (!%p2805_p4) target bundleno = 345 (0x159), region = 28 }
 0x116   : > { %v594_v22 = vpop.permute.xlu1 %593  ;;  %v592_v23 = vpop.permute.xlu0 %591 }
 0x117   : > { %633 = vst.msk [vmem:[%s3158_s18 + $0x78] sm:$0xff] %vm617_vm2, %v594_v22  ;;  %632 = vst.msk [vmem:[%s3158_s18 + $0x70] sm:$0xff] %vm617_vm2, %v592_v23 }
 0x11a   : > { %v598_v24 = vpop.permute.xlu1 %597  ;;  %v596_v25 = vpop.permute.xlu0 %595 }
 0x11b   : > { %635 = vst.msk [vmem:[%s3158_s18 + $0x88] sm:$0xff] %vm617_vm2, %v598_v24  ;;  %634 = vst.msk [vmem:[%s3158_s18 + $0x80] sm:$0xff] %vm617_vm2, %v596_v25 }
 0x11c   : > { %s3681_s20 = smov (!%p661_p8, %s660_s20), 18 }
 0x11d   : > { %s1974_s30 = sshll.u32 %s3681_s20, 7 }
 0x11e   : > { %p1977_p9 = scmp.eq.s32.totalorder %s1974_s30, 0 }
 0x11f   : > { %2385 = sdivrem.u32 (!%p1977_p9), %s3681_s20, 18 }
 0x120   : > { %669 = sbr.rel (%p1977_p9) target bundleno = 345 (0x159), region = 32 }
 0x128   : > { %s3209_s6 = spop.drf %2385 }
 0x129   : > { %p1978_p10 = scmp.le.s32.totalorder %s3209_s6, 0 }
 0x12a   : > { %s3662_s7 = smov (!%p1978_p10), %s3203_s29  ;;  %s3663_s8 = smov (!%p1978_p10), %s2833_s11 }
 0x12b   : > { %1777 = sbr.rel (%p1978_p10) target bundleno = 316 (0x13c), region = 396  ;;  %s3218_s9 = smov (!%p1978_p10), 0  }
 0x12c   : > { %s3220_s10 = smov (!%p1978_p10), 0  }
 0x132 LB: >> { %v767_v26 = vld [vmem:[%s2595_s8] sm:$0xff]  ;;  %v769_v27 = vld [vmem:[%s2595_s8 + $0x8] sm:$0xff]  ;;  %v771_v28 = vld [vmem:[%s2595_s8 + $0x10] sm:$0xff]  ;;  %s803_s12 = sadd.s32 1, %s2599_s9  ;;  %s761_s10 = sadd.s32 1, %s2603_s10   ;;  %s2603_s10 = sphi %s3220_s10, %s761_s10   ;;  %s2599_s9 = sphi %s3218_s9, %s3664_s9   ;;  %s2595_s8 = sphi %s3663_s8, %s808_s8   ;;  %s2591_s7 = sphi %s3662_s7, %s809_s7  }
 0x133   : >> { %768 = vst [vmem:[%s2591_s7] sm:$0xff] %v767_v26  ;;  %770 = vst [vmem:[%s2591_s7 + $0x8] sm:$0xff] %v769_v27  ;;  %v773_v29 = vld [vmem:[%s2595_s8 + $0x18] sm:$0xff]  ;;  %v775_v30 = vld [vmem:[%s2595_s8 + $0x20] sm:$0xff]  ;;  %p804_p11 = scmp.ge.s32.totalorder %s803_s12, %s3209_s6  ;;  %p760_p12 = scmp.ge.s32.totalorder %s761_s10, %s3209_s6 }
 0x134   : >> { %772 = vst [vmem:[%s2591_s7 + $0x10] sm:$0xff] %v771_v28  ;;  %v777_v31 = vld [vmem:[%s2595_s8 + $0x28] sm:$0xff]  ;;  %774 = vst [vmem:[%s2591_s7 + $0x18] sm:$0xff] %v773_v29  ;;  %v779_v32 = vld [vmem:[%s2595_s8 + $0x30] sm:$0xff] }
 0x135   : >> { %776 = vst [vmem:[%s2591_s7 + $0x20] sm:$0xff] %v775_v30  ;;  %778 = vst [vmem:[%s2591_s7 + $0x28] sm:$0xff] %v777_v31  ;;  %v781_v33 = vld [vmem:[%s2595_s8 + $0x38] sm:$0xff]  ;;  %v783_v34 = vld [vmem:[%s2595_s8 + $0x40] sm:$0xff]  ;;  %s3683_s12 = smov (%p804_p11, %s803_s12), 0  ;;  %763 = sbr.rel (!%p760_p12) target bundleno = 306 (0x132), region = 402 }
 0x136   : >> { %780 = vst [vmem:[%s2591_s7 + $0x30] sm:$0xff] %v779_v32  ;;  %782 = vst [vmem:[%s2591_s7 + $0x38] sm:$0xff] %v781_v33  ;;  %v785_v35 = vld [vmem:[%s2595_s8 + $0x48] sm:$0xff]  ;;  %v787_v36 = vld [vmem:[%s2595_s8 + $0x50] sm:$0xff]  ;;  %s806_s13 = smul.u32 144, %s3683_s12  ;;  %s3664_s9 = smov %s3683_s12 }
 0x137   : >> { %784 = vst [vmem:[%s2591_s7 + $0x40] sm:$0xff] %v783_v34  ;;  %v789_v37 = vld [vmem:[%s2595_s8 + $0x58] sm:$0xff]  ;;  %786 = vst [vmem:[%s2591_s7 + $0x48] sm:$0xff] %v785_v35  ;;  %v791_v38 = vld [vmem:[%s2595_s8 + $0x60] sm:$0xff] }
 0x138   : >> { %788 = vst [vmem:[%s2591_s7 + $0x50] sm:$0xff] %v787_v36  ;;  %790 = vst [vmem:[%s2591_s7 + $0x58] sm:$0xff] %v789_v37  ;;  %v793_v39 = vld [vmem:[%s2595_s8 + $0x68] sm:$0xff]  ;;  %v795_v40 = vld [vmem:[%s2595_s8 + $0x70] sm:$0xff] }
 0x139   : >> { %792 = vst [vmem:[%s2591_s7 + $0x60] sm:$0xff] %v791_v38  ;;  %794 = vst [vmem:[%s2591_s7 + $0x68] sm:$0xff] %v793_v39  ;;  %v797_v41 = vld [vmem:[%s2595_s8 + $0x78] sm:$0xff]  ;;  %v799_v42 = vld [vmem:[%s2595_s8 + $0x80] sm:$0xff] }
 0x13a   : >> { %796 = vst [vmem:[%s2591_s7 + $0x70] sm:$0xff] %v795_v40  ;;  %v801_v43 = vld [vmem:[%s2595_s8 + $0x88] sm:$0xff]  ;;  %798 = vst [vmem:[%s2591_s7 + $0x78] sm:$0xff] %v797_v41  ;;  %s808_s8 = scalar_lea.vmem %s2833_s11, %s806_s13 [#allocation2]  }
 0x13b   : >> { %800 = vst [vmem:[%s2591_s7 + $0x80] sm:$0xff] %v799_v42  ;;  %802 = vst [vmem:[%s2591_s7 + $0x88] sm:$0xff] %v801_v43  ;;  %s809_s7 = scalar_lea.vmem %s3203_s29, %s806_s13  }
 0x13c PF: > { %2387 = sdivrem.u32 %s3681_s20, 18 }
 0x13d   : > { %s1979_s14 = smul.u32 144, %s3209_s6 }
 0x13f   : > { %s814_s23 = scalar_lea.vmem %s2833_s11, %s1979_s14 [#allocation2]   ;;  %s816_s24 = scalar_lea.vmem %s3203_s29, %s1979_s14  }
 0x145   : > { %s2388_s28 = spop.drf %2387 }
 0x146   : > { %p1981_p13 = scmp.le.s32.totalorder %s2388_s28, 0 }
 0x147   : > { %s2605_s30 = smov (!%p1981_p13), %s816_s24   ;;  %s2609_s13 = smov (!%p1981_p13), %s814_s23  }
 0x148   : > { %1791 = sbr.rel (%p1981_p13) target bundleno = 345 (0x159), region = 407  ;;  %s2613_s0 = smov (!%p1981_p13), 0  }
 0x149   : > { %s2617_s1 = smov (!%p1981_p13), 0  }
 0x14f LB: >> { %v826_v44 = vld [vmem:[%s2611_s13] sm:$0xff]  ;;  %s828_s7 = sadd.s32 1, %s2615_s0  ;;  %s820_s1 = sadd.s32 1, %s2619_s1   ;;  %s2619_s1 = sphi %s2617_s1, %s820_s1   ;;  %s2615_s0 = sphi %s2613_s0, %s2614_s0   ;;  %s2611_s13 = sphi %s2609_s13, %s833_s13   ;;  %s2607_s30 = sphi %s2605_s30, %s834_s30  }
 0x150   : >> { %827 = vst [vmem:[%s2607_s30] sm:$0xff] %v826_v44  ;;  %p829_p0 = scmp.ge.s32.totalorder %s828_s7, %s2388_s28  ;;  %p819_p1 = scmp.ge.s32.totalorder %s820_s1, %s2388_s28 }
 0x152   : >> { %s3685_s7 = smov (%p829_p0, %s828_s7), 0  ;;  %822 = sbr.rel (!%p819_p1) target bundleno = 335 (0x14f), region = 413 }
 0x153   : >> { %s1982_s11 = sshll.u32 %s3685_s7, 3  ;;  %s2614_s0 = smov %s3685_s7  }
 0x154   : >> { %s833_s13 = scalar_lea.vmem %s814_s23, %s1982_s11 [#allocation2]   ;;  %s834_s30 = scalar_lea.vmem %s816_s24, %s1982_s11  }
 0x159 PF: > { %840 = sbr.rel (!%p2805_p4) target bundleno = 413 (0x19d), region = 80  ;;  %s842_s0 = ssub.s32 (%p2805_p4), 35, %s2810_s27 }
 0x15a   : > { %s2027_s20 = smul.u32 (%p2805_p4), 144, %s2794_s21  ;;  %p843_p2 = scmp.lt.s32.totalorder (%p2805_p4), %s842_s0, 18 }
 0x15c   : > { %s3292_s8 = scalar_lea.vmem (%p2805_p4), %s3653_s2, %s2027_s20  }
 0x160   : > { %s3687_s0 = smov (!%p843_p2, %s842_s0), 18 }
 0x161   : > { %s1984_s1 = sshll.u32 %s3687_s0, 7 }
 0x162   : > { %p1987_p3 = scmp.eq.s32.totalorder %s1984_s1, 0 }
 0x163   : > { %2389 = sdivrem.u32 (!%p1987_p3), %s3687_s0, 18 }
 0x164   : > { %851 = sbr.rel (%p1987_p3) target bundleno = 413 (0x19d), region = 84 }
 0x16c   : > { %s3298_s9 = spop.drf %2389 }
 0x16d   : > { %p1988_p5 = scmp.le.s32.totalorder %s3298_s9, 0 }
 0x16e   : > { %s3665_s10 = smov (!%p1988_p5), %s3292_s8  ;;  %s3666_s12 = smov (!%p1988_p5), %s3013_s15 }
 0x16f   : > { %1805 = sbr.rel (%p1988_p5) target bundleno = 384 (0x180), region = 418  ;;  %s3307_s14 = smov (!%p1988_p5), 0  }
 0x170   : > { %s3309_s23 = smov (!%p1988_p5), 0  }
 0x176 LB: >> { %v949_v45 = vld [vmem:[%s2627_s12] sm:$0xff]  ;;  %v951_v46 = vld [vmem:[%s2627_s12 + $0x8] sm:$0xff]  ;;  %v953_v47 = vld [vmem:[%s2627_s12 + $0x10] sm:$0xff]  ;;  %s985_s24 = sadd.s32 1, %s2631_s14  ;;  %s943_s23 = sadd.s32 1, %s2635_s23   ;;  %s2635_s23 = sphi %s3309_s23, %s943_s23   ;;  %s2631_s14 = sphi %s3307_s14, %s3667_s14   ;;  %s2627_s12 = sphi %s3666_s12, %s990_s12   ;;  %s2623_s10 = sphi %s3665_s10, %s991_s10  }
 0x177   : >> { %950 = vst [vmem:[%s2623_s10] sm:$0xff] %v949_v45  ;;  %952 = vst [vmem:[%s2623_s10 + $0x8] sm:$0xff] %v951_v46  ;;  %v955_v48 = vld [vmem:[%s2627_s12 + $0x18] sm:$0xff]  ;;  %v957_v49 = vld [vmem:[%s2627_s12 + $0x20] sm:$0xff]  ;;  %p986_p6 = scmp.ge.s32.totalorder %s985_s24, %s3298_s9  ;;  %p942_p7 = scmp.ge.s32.totalorder %s943_s23, %s3298_s9 }
 0x178   : >> { %954 = vst [vmem:[%s2623_s10 + $0x10] sm:$0xff] %v953_v47  ;;  %v959_v50 = vld [vmem:[%s2627_s12 + $0x28] sm:$0xff]  ;;  %956 = vst [vmem:[%s2623_s10 + $0x18] sm:$0xff] %v955_v48  ;;  %v961_v51 = vld [vmem:[%s2627_s12 + $0x30] sm:$0xff] }
 0x179   : >> { %958 = vst [vmem:[%s2623_s10 + $0x20] sm:$0xff] %v957_v49  ;;  %960 = vst [vmem:[%s2623_s10 + $0x28] sm:$0xff] %v959_v50  ;;  %v963_v52 = vld [vmem:[%s2627_s12 + $0x38] sm:$0xff]  ;;  %v965_v53 = vld [vmem:[%s2627_s12 + $0x40] sm:$0xff]  ;;  %s3689_s24 = smov (%p986_p6, %s985_s24), 0  ;;  %945 = sbr.rel (!%p942_p7) target bundleno = 374 (0x176), region = 424 }
 0x17a   : >> { %962 = vst [vmem:[%s2623_s10 + $0x30] sm:$0xff] %v961_v51  ;;  %964 = vst [vmem:[%s2623_s10 + $0x38] sm:$0xff] %v963_v52  ;;  %v967_v54 = vld [vmem:[%s2627_s12 + $0x48] sm:$0xff]  ;;  %v969_v55 = vld [vmem:[%s2627_s12 + $0x50] sm:$0xff]  ;;  %s988_s28 = smul.u32 144, %s3689_s24  ;;  %s3667_s14 = smov %s3689_s24 }
 0x17b   : >> { %966 = vst [vmem:[%s2623_s10 + $0x40] sm:$0xff] %v965_v53  ;;  %v971_v56 = vld [vmem:[%s2627_s12 + $0x58] sm:$0xff]  ;;  %968 = vst [vmem:[%s2623_s10 + $0x48] sm:$0xff] %v967_v54  ;;  %v973_v57 = vld [vmem:[%s2627_s12 + $0x60] sm:$0xff] }
 0x17c   : >> { %970 = vst [vmem:[%s2623_s10 + $0x50] sm:$0xff] %v969_v55  ;;  %972 = vst [vmem:[%s2623_s10 + $0x58] sm:$0xff] %v971_v56  ;;  %v975_v58 = vld [vmem:[%s2627_s12 + $0x68] sm:$0xff]  ;;  %v977_v59 = vld [vmem:[%s2627_s12 + $0x70] sm:$0xff] }
 0x17d   : >> { %974 = vst [vmem:[%s2623_s10 + $0x60] sm:$0xff] %v973_v57  ;;  %976 = vst [vmem:[%s2623_s10 + $0x68] sm:$0xff] %v975_v58  ;;  %v979_v60 = vld [vmem:[%s2627_s12 + $0x78] sm:$0xff]  ;;  %v981_v61 = vld [vmem:[%s2627_s12 + $0x80] sm:$0xff] }
 0x17e   : >> { %978 = vst [vmem:[%s2623_s10 + $0x70] sm:$0xff] %v977_v59  ;;  %v983_v62 = vld [vmem:[%s2627_s12 + $0x88] sm:$0xff]  ;;  %980 = vst [vmem:[%s2623_s10 + $0x78] sm:$0xff] %v979_v60  ;;  %s990_s12 = scalar_lea.vmem %s3013_s15, %s988_s28 [#allocation3]  }
 0x17f   : >> { %982 = vst [vmem:[%s2623_s10 + $0x80] sm:$0xff] %v981_v61  ;;  %984 = vst [vmem:[%s2623_s10 + $0x88] sm:$0xff] %v983_v62  ;;  %s991_s10 = scalar_lea.vmem %s3292_s8, %s988_s28  }
 0x180 PF: > { %2391 = sdivrem.u32 %s3687_s0, 18 }
 0x181   : > { %s1989_s30 = smul.u32 144, %s3298_s9 }
 0x183   : > { %s996_s13 = scalar_lea.vmem %s3013_s15, %s1989_s30 [#allocation3]   ;;  %s998_s7 = scalar_lea.vmem %s3292_s8, %s1989_s30  }
 0x189   : > { %s2392_s11 = spop.drf %2391 }
 0x18a   : > { %p1991_p8 = scmp.le.s32.totalorder %s2392_s11, 0 }
 0x18b   : > { %s2637_s20 = smov (!%p1991_p8), %s998_s7   ;;  %s2641_s29 = smov (!%p1991_p8), %s996_s13  }
 0x18c   : > { %1819 = sbr.rel (%p1991_p8) target bundleno = 413 (0x19d), region = 429  ;;  %s2645_s6 = smov (!%p1991_p8), 0  }
 0x18d   : > { %s2649_s1 = smov (!%p1991_p8), 0  }
 0x193 LB: >> { %v1008_v63 = vld [vmem:[%s2643_s29] sm:$0xff]  ;;  %s1010_s10 = sadd.s32 1, %s2647_s6  ;;  %s1002_s1 = sadd.s32 1, %s2651_s1   ;;  %s2651_s1 = sphi %s2649_s1, %s1002_s1   ;;  %s2647_s6 = sphi %s2645_s6, %s2646_s6   ;;  %s2643_s29 = sphi %s2641_s29, %s1015_s29   ;;  %s2639_s20 = sphi %s2637_s20, %s1016_s20  }
 0x194   : >> { %1009 = vst [vmem:[%s2639_s20] sm:$0xff] %v1008_v63  ;;  %p1011_p9 = scmp.ge.s32.totalorder %s1010_s10, %s2392_s11  ;;  %p1001_p10 = scmp.ge.s32.totalorder %s1002_s1, %s2392_s11 }
 0x196   : >> { %s3691_s10 = smov (%p1011_p9, %s1010_s10), 0  ;;  %1004 = sbr.rel (!%p1001_p10) target bundleno = 403 (0x193), region = 435 }
 0x197   : >> { %s1992_s15 = sshll.u32 %s3691_s10, 3  ;;  %s2646_s6 = smov %s3691_s10  }
 0x198   : >> { %s1015_s29 = scalar_lea.vmem %s996_s13, %s1992_s15 [#allocation3]   ;;  %s1016_s20 = scalar_lea.vmem %s998_s7, %s1992_s15  }
 0x19d PF: > { %1022 = sbr.rel (!%p2805_p4) target bundleno = 481 (0x1e1), region = 132  ;;  %s1024_s0 = ssub.s32 (%p2805_p4), 35, %s2810_s27 }
 0x19e   : > { %s2028_s8 = smul.u32 (%p2805_p4), 144, %s2794_s21  ;;  %p1025_p11 = scmp.lt.s32.totalorder (%p2805_p4), %s1024_s0, 18 }
 0x1a0   : > { %s3381_s14 = scalar_lea.vmem (%p2805_p4), %s3654_s3, %s2028_s8  }
 0x1a4   : > { %s3693_s0 = smov (!%p1025_p11, %s1024_s0), 18 }
 0x1a5   : > { %s1994_s23 = sshll.u32 %s3693_s0, 7 }
 0x1a6   : > { %p1997_p12 = scmp.eq.s32.totalorder %s1994_s23, 0 }
 0x1a7   : > { %2393 = sdivrem.u32 (!%p1997_p12), %s3693_s0, 18 }
 0x1a8   : > { %1033 = sbr.rel (%p1997_p12) target bundleno = 481 (0x1e1), region = 136 }
 0x1b0   : > { %s3387_s24 = spop.drf %2393 }
 0x1b1   : > { %p1998_p13 = scmp.le.s32.totalorder %s3387_s24, 0 }
 0x1b2   : > { %s3668_s28 = smov (!%p1998_p13), %s3381_s14  ;;  %s3669_s30 = smov (!%p1998_p13), %s3080_s16 }
 0x1b3   : > { %1833 = sbr.rel (%p1998_p13) target bundleno = 452 (0x1c4), region = 440  ;;  %s3396_s13 = smov (!%p1998_p13), 0  }
 0x1b4   : > { %s3398_s7 = smov (!%p1998_p13), 0  }
 0x1ba LB: >> { %v1131_v0 = vld [vmem:[%s2659_s30] sm:$0xff]  ;;  %v1133_v1 = vld [vmem:[%s2659_s30 + $0x8] sm:$0xff]  ;;  %v1135_v2 = vld [vmem:[%s2659_s30 + $0x10] sm:$0xff]  ;;  %s1167_s11 = sadd.s32 1, %s2663_s13  ;;  %s1125_s7 = sadd.s32 1, %s2667_s7   ;;  %s2667_s7 = sphi %s3398_s7, %s1125_s7   ;;  %s2663_s13 = sphi %s3396_s13, %s3670_s13   ;;  %s2659_s30 = sphi %s3669_s30, %s1172_s30   ;;  %s2655_s28 = sphi %s3668_s28, %s1173_s28  }
 0x1bb   : >> { %1132 = vst [vmem:[%s2655_s28] sm:$0xff] %v1131_v0  ;;  %1134 = vst [vmem:[%s2655_s28 + $0x8] sm:$0xff] %v1133_v1  ;;  %v1137_v3 = vld [vmem:[%s2659_s30 + $0x18] sm:$0xff]  ;;  %v1139_v4 = vld [vmem:[%s2659_s30 + $0x20] sm:$0xff]  ;;  %p1168_p0 = scmp.ge.s32.totalorder %s1167_s11, %s3387_s24  ;;  %p1124_p1 = scmp.ge.s32.totalorder %s1125_s7, %s3387_s24 }
 0x1bc   : >> { %1136 = vst [vmem:[%s2655_s28 + $0x10] sm:$0xff] %v1135_v2  ;;  %v1141_v5 = vld [vmem:[%s2659_s30 + $0x28] sm:$0xff]  ;;  %1138 = vst [vmem:[%s2655_s28 + $0x18] sm:$0xff] %v1137_v3  ;;  %v1143_v6 = vld [vmem:[%s2659_s30 + $0x30] sm:$0xff] }
 0x1bd   : >> { %1140 = vst [vmem:[%s2655_s28 + $0x20] sm:$0xff] %v1139_v4  ;;  %1142 = vst [vmem:[%s2655_s28 + $0x28] sm:$0xff] %v1141_v5  ;;  %v1145_v7 = vld [vmem:[%s2659_s30 + $0x38] sm:$0xff]  ;;  %v1147_v8 = vld [vmem:[%s2659_s30 + $0x40] sm:$0xff]  ;;  %s3695_s11 = smov (%p1168_p0, %s1167_s11), 0  ;;  %1127 = sbr.rel (!%p1124_p1) target bundleno = 442 (0x1ba), region = 446 }
 0x1be   : >> { %1144 = vst [vmem:[%s2655_s28 + $0x30] sm:$0xff] %v1143_v6  ;;  %1146 = vst [vmem:[%s2655_s28 + $0x38] sm:$0xff] %v1145_v7  ;;  %v1149_v9 = vld [vmem:[%s2659_s30 + $0x48] sm:$0xff]  ;;  %v1151_v10 = vld [vmem:[%s2659_s30 + $0x50] sm:$0xff]  ;;  %s1170_s20 = smul.u32 144, %s3695_s11  ;;  %s3670_s13 = smov %s3695_s11 }
 0x1bf   : >> { %1148 = vst [vmem:[%s2655_s28 + $0x40] sm:$0xff] %v1147_v8  ;;  %v1153_v11 = vld [vmem:[%s2659_s30 + $0x58] sm:$0xff]  ;;  %1150 = vst [vmem:[%s2655_s28 + $0x48] sm:$0xff] %v1149_v9  ;;  %v1155_v12 = vld [vmem:[%s2659_s30 + $0x60] sm:$0xff] }
 0x1c0   : >> { %1152 = vst [vmem:[%s2655_s28 + $0x50] sm:$0xff] %v1151_v10  ;;  %1154 = vst [vmem:[%s2655_s28 + $0x58] sm:$0xff] %v1153_v11  ;;  %v1157_v13 = vld [vmem:[%s2659_s30 + $0x68] sm:$0xff]  ;;  %v1159_v14 = vld [vmem:[%s2659_s30 + $0x70] sm:$0xff] }
 0x1c1   : >> { %1156 = vst [vmem:[%s2655_s28 + $0x60] sm:$0xff] %v1155_v12  ;;  %1158 = vst [vmem:[%s2655_s28 + $0x68] sm:$0xff] %v1157_v13  ;;  %v1161_v15 = vld [vmem:[%s2659_s30 + $0x78] sm:$0xff]  ;;  %v1163_v16 = vld [vmem:[%s2659_s30 + $0x80] sm:$0xff] }
 0x1c2   : >> { %1160 = vst [vmem:[%s2655_s28 + $0x70] sm:$0xff] %v1159_v14  ;;  %v1165_v17 = vld [vmem:[%s2659_s30 + $0x88] sm:$0xff]  ;;  %1162 = vst [vmem:[%s2655_s28 + $0x78] sm:$0xff] %v1161_v15  ;;  %s1172_s30 = scalar_lea.vmem %s3080_s16, %s1170_s20 [#allocation4]  }
 0x1c3   : >> { %1164 = vst [vmem:[%s2655_s28 + $0x80] sm:$0xff] %v1163_v16  ;;  %1166 = vst [vmem:[%s2655_s28 + $0x88] sm:$0xff] %v1165_v17  ;;  %s1173_s28 = scalar_lea.vmem %s3381_s14, %s1170_s20  }
 0x1c4 PF: > { %2395 = sdivrem.u32 %s3693_s0, 18 }
 0x1c5   : > { %s1999_s29 = smul.u32 144, %s3387_s24 }
 0x1c7   : > { %s1178_s6 = scalar_lea.vmem %s3080_s16, %s1999_s29 [#allocation4]   ;;  %s1180_s1 = scalar_lea.vmem %s3381_s14, %s1999_s29  }
 0x1cd   : > { %s2396_s10 = spop.drf %2395 }
 0x1ce   : > { %p2001_p2 = scmp.le.s32.totalorder %s2396_s10, 0 }
 0x1cf   : > { %s2669_s15 = smov (!%p2001_p2), %s1180_s1   ;;  %s2673_s8 = smov (!%p2001_p2), %s1178_s6  }
 0x1d0   : > { %1847 = sbr.rel (%p2001_p2) target bundleno = 481 (0x1e1), region = 451  ;;  %s2677_s9 = smov (!%p2001_p2), 0  }
 0x1d1   : > { %s2681_s12 = smov (!%p2001_p2), 0  }
 0x1d7 LB: >> { %v1190_v18 = vld [vmem:[%s2675_s8] sm:$0xff]  ;;  %s1192_s23 = sadd.s32 1, %s2679_s9  ;;  %s1184_s12 = sadd.s32 1, %s2683_s12   ;;  %s2683_s12 = sphi %s2681_s12, %s1184_s12   ;;  %s2679_s9 = sphi %s2677_s9, %s2678_s9   ;;  %s2675_s8 = sphi %s2673_s8, %s1197_s8   ;;  %s2671_s15 = sphi %s2669_s15, %s1198_s15  }
 0x1d8   : >> { %1191 = vst [vmem:[%s2671_s15] sm:$0xff] %v1190_v18  ;;  %p1193_p3 = scmp.ge.s32.totalorder %s1192_s23, %s2396_s10  ;;  %p1183_p5 = scmp.ge.s32.totalorder %s1184_s12, %s2396_s10 }
 0x1da   : >> { %s3697_s23 = smov (%p1193_p3, %s1192_s23), 0  ;;  %1186 = sbr.rel (!%p1183_p5) target bundleno = 471 (0x1d7), region = 457 }
 0x1db   : >> { %s2002_s16 = sshll.u32 %s3697_s23, 3  ;;  %s2678_s9 = smov %s3697_s23  }
 0x1dc   : >> { %s1197_s8 = scalar_lea.vmem %s1178_s6, %s2002_s16 [#allocation4]   ;;  %s1198_s15 = scalar_lea.vmem %s1180_s1, %s2002_s16  }
 0x1e1 PF: > { %1204 = sbr.rel (!%p2805_p4) target bundleno = 549 (0x225), region = 184  ;;  %s1206_s0 = ssub.s32 (%p2805_p4), 35, %s2810_s27 }
 0x1e2   : > { %s2029_s14 = smul.u32 (%p2805_p4), 144, %s2794_s21  ;;  %p1207_p6 = scmp.lt.s32.totalorder (%p2805_p4), %s1206_s0, 18 }
 0x1e4   : > { %s3470_s30 = scalar_lea.vmem (%p2805_p4), %s3655_s4, %s2029_s14  }
 0x1e8   : > { %s3699_s0 = smov (!%p1207_p6, %s1206_s0), 18 }
 0x1e9   : > { %s2004_s13 = sshll.u32 %s3699_s0, 7 }
 0x1ea   : > { %p2007_p7 = scmp.eq.s32.totalorder %s2004_s13, 0 }
 0x1eb   : > { %2397 = sdivrem.u32 (!%p2007_p7), %s3699_s0, 18 }
 0x1ec   : > { %1215 = sbr.rel (%p2007_p7) target bundleno = 549 (0x225), region = 188 }
 0x1f4   : > { %s3476_s7 = spop.drf %2397 }
 0x1f5   : > { %p2008_p8 = scmp.le.s32.totalorder %s3476_s7, 0 }
 0x1f6   : > { %s3671_s11 = smov (!%p2008_p8), %s3470_s30  ;;  %s3672_s20 = smov (!%p2008_p8), %s3119_s17 }
 0x1f7   : > { %1861 = sbr.rel (%p2008_p8) target bundleno = 520 (0x208), region = 462  ;;  %s3485_s29 = smov (!%p2008_p8), 0  }
 0x1f8   : > { %s3487_s6 = smov (!%p2008_p8), 0  }
 0x1fe LB: >> { %v1313_v19 = vld [vmem:[%s2691_s20] sm:$0xff]  ;;  %v1315_v20 = vld [vmem:[%s2691_s20 + $0x8] sm:$0xff]  ;;  %v1317_v21 = vld [vmem:[%s2691_s20 + $0x10] sm:$0xff]  ;;  %s1349_s1 = sadd.s32 1, %s2695_s29  ;;  %s1307_s6 = sadd.s32 1, %s2699_s6   ;;  %s2699_s6 = sphi %s3487_s6, %s1307_s6   ;;  %s2695_s29 = sphi %s3485_s29, %s3673_s29   ;;  %s2691_s20 = sphi %s3672_s20, %s1354_s20   ;;  %s2687_s11 = sphi %s3671_s11, %s1355_s11  }
 0x1ff   : >> { %1314 = vst [vmem:[%s2687_s11] sm:$0xff] %v1313_v19  ;;  %1316 = vst [vmem:[%s2687_s11 + $0x8] sm:$0xff] %v1315_v20  ;;  %v1319_v22 = vld [vmem:[%s2691_s20 + $0x18] sm:$0xff]  ;;  %v1321_v23 = vld [vmem:[%s2691_s20 + $0x20] sm:$0xff]  ;;  %p1350_p9 = scmp.ge.s32.totalorder %s1349_s1, %s3476_s7  ;;  %p1306_p10 = scmp.ge.s32.totalorder %s1307_s6, %s3476_s7 }
 0x200   : >> { %1318 = vst [vmem:[%s2687_s11 + $0x10] sm:$0xff] %v1317_v21  ;;  %v1323_v24 = vld [vmem:[%s2691_s20 + $0x28] sm:$0xff]  ;;  %1320 = vst [vmem:[%s2687_s11 + $0x18] sm:$0xff] %v1319_v22  ;;  %v1325_v25 = vld [vmem:[%s2691_s20 + $0x30] sm:$0xff] }
 0x201   : >> { %1322 = vst [vmem:[%s2687_s11 + $0x20] sm:$0xff] %v1321_v23  ;;  %1324 = vst [vmem:[%s2687_s11 + $0x28] sm:$0xff] %v1323_v24  ;;  %v1327_v26 = vld [vmem:[%s2691_s20 + $0x38] sm:$0xff]  ;;  %v1329_v27 = vld [vmem:[%s2691_s20 + $0x40] sm:$0xff]  ;;  %s3701_s1 = smov (%p1350_p9, %s1349_s1), 0  ;;  %1309 = sbr.rel (!%p1306_p10) target bundleno = 510 (0x1fe), region = 468 }
 0x202   : >> { %1326 = vst [vmem:[%s2687_s11 + $0x30] sm:$0xff] %v1325_v25  ;;  %1328 = vst [vmem:[%s2687_s11 + $0x38] sm:$0xff] %v1327_v26  ;;  %v1331_v28 = vld [vmem:[%s2691_s20 + $0x48] sm:$0xff]  ;;  %v1333_v29 = vld [vmem:[%s2691_s20 + $0x50] sm:$0xff]  ;;  %s1352_s10 = smul.u32 144, %s3701_s1  ;;  %s3673_s29 = smov %s3701_s1 }
 0x203   : >> { %1330 = vst [vmem:[%s2687_s11 + $0x40] sm:$0xff] %v1329_v27  ;;  %v1335_v30 = vld [vmem:[%s2691_s20 + $0x58] sm:$0xff]  ;;  %1332 = vst [vmem:[%s2687_s11 + $0x48] sm:$0xff] %v1331_v28  ;;  %v1337_v31 = vld [vmem:[%s2691_s20 + $0x60] sm:$0xff] }
 0x204   : >> { %1334 = vst [vmem:[%s2687_s11 + $0x50] sm:$0xff] %v1333_v29  ;;  %1336 = vst [vmem:[%s2687_s11 + $0x58] sm:$0xff] %v1335_v30  ;;  %v1339_v32 = vld [vmem:[%s2691_s20 + $0x68] sm:$0xff]  ;;  %v1341_v33 = vld [vmem:[%s2691_s20 + $0x70] sm:$0xff] }
 0x205   : >> { %1338 = vst [vmem:[%s2687_s11 + $0x60] sm:$0xff] %v1337_v31  ;;  %1340 = vst [vmem:[%s2687_s11 + $0x68] sm:$0xff] %v1339_v32  ;;  %v1343_v34 = vld [vmem:[%s2691_s20 + $0x78] sm:$0xff]  ;;  %v1345_v35 = vld [vmem:[%s2691_s20 + $0x80] sm:$0xff] }
 0x206   : >> { %1342 = vst [vmem:[%s2687_s11 + $0x70] sm:$0xff] %v1341_v33  ;;  %v1347_v36 = vld [vmem:[%s2691_s20 + $0x88] sm:$0xff]  ;;  %1344 = vst [vmem:[%s2687_s11 + $0x78] sm:$0xff] %v1343_v34  ;;  %s1354_s20 = scalar_lea.vmem %s3119_s17, %s1352_s10 [#allocation5]  }
 0x207   : >> { %1346 = vst [vmem:[%s2687_s11 + $0x80] sm:$0xff] %v1345_v35  ;;  %1348 = vst [vmem:[%s2687_s11 + $0x88] sm:$0xff] %v1347_v36  ;;  %s1355_s11 = scalar_lea.vmem %s3470_s30, %s1352_s10  }
 0x208 PF: > { %2399 = sdivrem.u32 %s3699_s0, 18 }
 0x209   : > { %s2009_s15 = smul.u32 144, %s3476_s7 }
 0x20b   : > { %s1360_s8 = scalar_lea.vmem %s3119_s17, %s2009_s15 [#allocation5]   ;;  %s1362_s9 = scalar_lea.vmem %s3470_s30, %s2009_s15  }
 0x211   : > { %s2400_s12 = spop.drf %2399 }
 0x212   : > { %p2011_p11 = scmp.le.s32.totalorder %s2400_s12, 0 }
 0x213   : > { %s2701_s23 = smov (!%p2011_p11), %s1362_s9   ;;  %s2705_s16 = smov (!%p2011_p11), %s1360_s8  }
 0x214   : > { %1875 = sbr.rel (%p2011_p11) target bundleno = 549 (0x225), region = 473  ;;  %s2709_s14 = smov (!%p2011_p11), 0  }
 0x215   : > { %s2713_s24 = smov (!%p2011_p11), 0  }
 0x21b LB: >> { %v1372_v37 = vld [vmem:[%s2707_s16] sm:$0xff]  ;;  %s1374_s28 = sadd.s32 1, %s2711_s14  ;;  %s1366_s24 = sadd.s32 1, %s2715_s24   ;;  %s2715_s24 = sphi %s2713_s24, %s1366_s24   ;;  %s2711_s14 = sphi %s2709_s14, %s2710_s14   ;;  %s2707_s16 = sphi %s2705_s16, %s1379_s16   ;;  %s2703_s23 = sphi %s2701_s23, %s1380_s23  }
 0x21c   : >> { %1373 = vst [vmem:[%s2703_s23] sm:$0xff] %v1372_v37  ;;  %p1375_p12 = scmp.ge.s32.totalorder %s1374_s28, %s2400_s12  ;;  %p1365_p13 = scmp.ge.s32.totalorder %s1366_s24, %s2400_s12 }
 0x21e   : >> { %s3703_s28 = smov (%p1375_p12, %s1374_s28), 0  ;;  %1368 = sbr.rel (!%p1365_p13) target bundleno = 539 (0x21b), region = 479 }
 0x21f   : >> { %s2012_s17 = sshll.u32 %s3703_s28, 3  ;;  %s2710_s14 = smov %s3703_s28  }
 0x220   : >> { %s1379_s16 = scalar_lea.vmem %s1360_s8, %s2012_s17 [#allocation5]   ;;  %s1380_s23 = scalar_lea.vmem %s1362_s9, %s2012_s17  }
 0x225 PF: > { %1386 = sbr.rel (!%p2805_p4) target bundleno = 617 (0x269), region = 236  ;;  %s1388_s0 = ssub.s32 (%p2805_p4), 35, %s2810_s27 }
 0x226   : > { %s2030_s30 = smul.u32 (%p2805_p4), 144, %s2794_s21  ;;  %p1389_p0 = scmp.lt.s32.totalorder (%p2805_p4), %s1388_s0, 18 }
 0x228   : > { %s3559_s11 = scalar_lea.vmem (%p2805_p4), %s3656_s5, %s2030_s30  }
 0x22c   : > { %s3705_s0 = smov (!%p1389_p0, %s1388_s0), 18 }
 0x22d   : > { %s2014_s20 = sshll.u32 %s3705_s0, 7 }
 0x22e   : > { %p2017_p1 = scmp.eq.s32.totalorder %s2014_s20, 0 }
 0x22f   : > { %2401 = sdivrem.u32 (!%p2017_p1), %s3705_s0, 18 }
 0x230   : > { %1397 = sbr.rel (%p2017_p1) target bundleno = 617 (0x269), region = 240 }
 0x238   : > { %s3565_s26 = spop.drf %2401 }
 0x239   : > { %p2018_p4 = scmp.le.s32.totalorder %s3565_s26, 0 }
 0x23a   : > { %s3674_s21 = smov (!%p2018_p4), %s3559_s11  ;;  %s3675_s27 = smov (!%p2018_p4), %s3158_s18 }
 0x23b   : > { %1889 = sbr.rel (%p2018_p4) target bundleno = 588 (0x24c), region = 484  ;;  %s3574_s29 = smov (!%p2018_p4), 0  }
 0x23c   : > { %s3576_s6 = smov (!%p2018_p4), 0  }
 0x242 LB: >> { %v1495_v38 = vld [vmem:[%s2723_s27] sm:$0xff]  ;;  %v1497_v39 = vld [vmem:[%s2723_s27 + $0x8] sm:$0xff]  ;;  %v1499_v40 = vld [vmem:[%s2723_s27 + $0x10] sm:$0xff]  ;;  %s1531_s1 = sadd.s32 1, %s2727_s29  ;;  %s1489_s6 = sadd.s32 1, %s2731_s6   ;;  %s2731_s6 = sphi %s3576_s6, %s1489_s6   ;;  %s2727_s29 = sphi %s3574_s29, %s3676_s29   ;;  %s2723_s27 = sphi %s3675_s27, %s1536_s27   ;;  %s2719_s21 = sphi %s3674_s21, %s1537_s21  }
 0x243   : >> { %1496 = vst [vmem:[%s2719_s21] sm:$0xff] %v1495_v38  ;;  %1498 = vst [vmem:[%s2719_s21 + $0x8] sm:$0xff] %v1497_v39  ;;  %v1501_v41 = vld [vmem:[%s2723_s27 + $0x18] sm:$0xff]  ;;  %v1503_v42 = vld [vmem:[%s2723_s27 + $0x20] sm:$0xff]  ;;  %p1532_p2 = scmp.ge.s32.totalorder %s1531_s1, %s3565_s26  ;;  %p1488_p3 = scmp.ge.s32.totalorder %s1489_s6, %s3565_s26 }
 0x244   : >> { %1500 = vst [vmem:[%s2719_s21 + $0x10] sm:$0xff] %v1499_v40  ;;  %v1505_v43 = vld [vmem:[%s2723_s27 + $0x28] sm:$0xff]  ;;  %1502 = vst [vmem:[%s2719_s21 + $0x18] sm:$0xff] %v1501_v41  ;;  %v1507_v44 = vld [vmem:[%s2723_s27 + $0x30] sm:$0xff] }
 0x245   : >> { %1504 = vst [vmem:[%s2719_s21 + $0x20] sm:$0xff] %v1503_v42  ;;  %1506 = vst [vmem:[%s2719_s21 + $0x28] sm:$0xff] %v1505_v43  ;;  %v1509_v45 = vld [vmem:[%s2723_s27 + $0x38] sm:$0xff]  ;;  %v1511_v46 = vld [vmem:[%s2723_s27 + $0x40] sm:$0xff]  ;;  %s3707_s1 = smov (%p1532_p2, %s1531_s1), 0  ;;  %1491 = sbr.rel (!%p1488_p3) target bundleno = 578 (0x242), region = 490 }
 0x246   : >> { %1508 = vst [vmem:[%s2719_s21 + $0x30] sm:$0xff] %v1507_v44  ;;  %1510 = vst [vmem:[%s2719_s21 + $0x38] sm:$0xff] %v1509_v45  ;;  %v1513_v47 = vld [vmem:[%s2723_s27 + $0x48] sm:$0xff]  ;;  %v1515_v48 = vld [vmem:[%s2723_s27 + $0x50] sm:$0xff]  ;;  %s1534_s10 = smul.u32 144, %s3707_s1  ;;  %s3676_s29 = smov %s3707_s1 }
 0x247   : >> { %1512 = vst [vmem:[%s2719_s21 + $0x40] sm:$0xff] %v1511_v46  ;;  %v1517_v49 = vld [vmem:[%s2723_s27 + $0x58] sm:$0xff]  ;;  %1514 = vst [vmem:[%s2719_s21 + $0x48] sm:$0xff] %v1513_v47  ;;  %v1519_v50 = vld [vmem:[%s2723_s27 + $0x60] sm:$0xff] }
 0x248   : >> { %1516 = vst [vmem:[%s2719_s21 + $0x50] sm:$0xff] %v1515_v48  ;;  %1518 = vst [vmem:[%s2719_s21 + $0x58] sm:$0xff] %v1517_v49  ;;  %v1521_v51 = vld [vmem:[%s2723_s27 + $0x68] sm:$0xff]  ;;  %v1523_v52 = vld [vmem:[%s2723_s27 + $0x70] sm:$0xff] }
 0x249   : >> { %1520 = vst [vmem:[%s2719_s21 + $0x60] sm:$0xff] %v1519_v50  ;;  %1522 = vst [vmem:[%s2719_s21 + $0x68] sm:$0xff] %v1521_v51  ;;  %v1525_v53 = vld [vmem:[%s2723_s27 + $0x78] sm:$0xff]  ;;  %v1527_v54 = vld [vmem:[%s2723_s27 + $0x80] sm:$0xff] }
 0x24a   : >> { %1524 = vst [vmem:[%s2719_s21 + $0x70] sm:$0xff] %v1523_v52  ;;  %v1529_v55 = vld [vmem:[%s2723_s27 + $0x88] sm:$0xff]  ;;  %1526 = vst [vmem:[%s2719_s21 + $0x78] sm:$0xff] %v1525_v53  ;;  %s1536_s27 = scalar_lea.vmem %s3158_s18, %s1534_s10 [#allocation6]  }
 0x24b   : >> { %1528 = vst [vmem:[%s2719_s21 + $0x80] sm:$0xff] %v1527_v54  ;;  %1530 = vst [vmem:[%s2719_s21 + $0x88] sm:$0xff] %v1529_v55  ;;  %s1537_s21 = scalar_lea.vmem %s3559_s11, %s1534_s10  }
 0x24c PF: > { %2403 = sdivrem.u32 %s3705_s0, 18 }
 0x24d   : > { %s2019_s15 = smul.u32 144, %s3565_s26 }
 0x24f   : > { %s1542_s8 = scalar_lea.vmem %s3158_s18, %s2019_s15 [#allocation6]   ;;  %s1544_s9 = scalar_lea.vmem %s3559_s11, %s2019_s15  }
 0x255   : > { %s2404_s12 = spop.drf %2403 }
 0x256   : > { %p2021_p5 = scmp.le.s32.totalorder %s2404_s12, 0 }
 0x257   : > { %s2733_s23 = smov (!%p2021_p5), %s1544_s9   ;;  %s2737_s16 = smov (!%p2021_p5), %s1542_s8  }
 0x258   : > { %1903 = sbr.rel (%p2021_p5) target bundleno = 617 (0x269), region = 495  ;;  %s2741_s14 = smov (!%p2021_p5), 0  }
 0x259   : > { %s2745_s24 = smov (!%p2021_p5), 0  }
 0x25f LB: >> { %v1554_v56 = vld [vmem:[%s2739_s16] sm:$0xff]  ;;  %s1556_s28 = sadd.s32 1, %s2743_s14  ;;  %s1548_s24 = sadd.s32 1, %s2747_s24   ;;  %s2747_s24 = sphi %s2745_s24, %s1548_s24   ;;  %s2743_s14 = sphi %s2741_s14, %s2742_s14   ;;  %s2739_s16 = sphi %s2737_s16, %s1561_s16   ;;  %s2735_s23 = sphi %s2733_s23, %s1562_s23  }
 0x260   : >> { %1555 = vst [vmem:[%s2735_s23] sm:$0xff] %v1554_v56  ;;  %p1557_p6 = scmp.ge.s32.totalorder %s1556_s28, %s2404_s12  ;;  %p1547_p7 = scmp.ge.s32.totalorder %s1548_s24, %s2404_s12 }
 0x262   : >> { %s3709_s28 = smov (%p1557_p6, %s1556_s28), 0  ;;  %1550 = sbr.rel (!%p1547_p7) target bundleno = 607 (0x25f), region = 501 }
 0x263   : >> { %s2022_s18 = sshll.u32 %s3709_s28, 3  ;;  %s2742_s14 = smov %s3709_s28  }
 0x264   : >> { %s1561_s16 = scalar_lea.vmem %s1542_s8, %s2022_s18 [#allocation6]   ;;  %s1562_s23 = scalar_lea.vmem %s1544_s9, %s2022_s18  }
 0x269 PF: > { %p13_p8 = scmp.ge.s32.totalorder %s2796_s22, 4   ;;  %s3677_s18 = smov %s2583_s19 }
 0x26a   : > { %s3678_s19 = smov %s2803_s25  ;;  %s3679_s20 = smov %s2796_s22 }
 0x26b   :  { %15 = sbr.rel (!%p13_p8) target bundleno = 5 (0x5), region = 512 }

</bundles_post_ra>
